<compile_context>
chip_gen: v6e
topology: v6e:2x2x1
jax: 0.10.0
libtpu: 0.0.40
codegen_flags: <defaults>
</compile_context>

<pallas_src>
import functools

import jax
import jax.numpy as jnp
from jax import lax
from jax.experimental import pallas as pl
from jax.experimental.pallas import tpu as pltpu


def _ce_kernel(logits_ref, target_ref, sum_ref, cnt_ref, cls_ref, *,
               ignore_label, num_pixels, tile_p, num_tiles, tiles_per_half):
    """One (image n, pixel-half h, pixel-tile k) grid step.

    logits_ref: (1, C, TP)  logits (any float dtype; upcast here), pixels on lanes
    target_ref: (1, 1, TP)  narrow int labels
    sum_ref:    (1, 1, TP)  per-lane running loss sum    (resident across k)
    cnt_ref:    (1, 1, TP)  per-lane running valid count (resident across k)
    cls_ref:    (1, C, TP)  int32 class-index iota scratch (filled at k == 0)
    """
    h = pl.program_id(1)
    k = pl.program_id(2)

    @pl.when(k == 0)
    def _init():
        sum_ref[...] = jnp.zeros_like(sum_ref)
        cnt_ref[...] = jnp.zeros_like(cnt_ref)
        # Class iota hoisted out of the per-tile body.  Regenerated once per (image, half)
        # so it is always initialized on whichever TensorCore runs this grid slice.
        cls_ref[...] = lax.broadcasted_iota(jnp.int32, cls_ref.shape, 1)

    x = logits_ref[...].astype(jnp.float32)           # (1, C, TP)
    t = target_ref[...].astype(jnp.int32)             # (1, 1, TP)

    # numerically-stable log-sum-exp over the class (sublane) axis
    m = jnp.max(x, axis=1, keepdims=True)             # (1, 1, TP)
    lse = m + jnp.log(jnp.sum(jnp.exp(x - m), axis=1, keepdims=True))

    # gather the target-class logit via one-hot compare (no dynamic gather on TPU)
    picked = jnp.sum(jnp.where(cls_ref[...] == t, x, 0.0), axis=1, keepdims=True)

    loss = lse - picked                                # (1, 1, TP)
    base_valid = t != ignore_label

    ragged = (num_pixels % tile_p) != 0
    if not ragged:
        # Tail mask statically compiled out.
        sum_ref[...] += jnp.where(base_valid, loss, 0.0)
        cnt_ref[...] += base_valid.astype(jnp.float32)
    else:
        g = h * tiles_per_half + k                     # global pixel-tile index
        is_tail = g == (num_tiles - 1)                 # only the last data tile is ragged

        @pl.when(jnp.logical_not(is_tail))
        def _full_tile():
            sum_ref[...] += jnp.where(base_valid, loss, 0.0)
            cnt_ref[...] += base_valid.astype(jnp.float32)

        @pl.when(is_tail)
        def _tail_tile():
            pix = (lax.broadcasted_iota(jnp.int32, base_valid.shape, 2)
                   + (num_tiles - 1) * tile_p)
            valid = jnp.logical_and(base_valid, pix < num_pixels)
            sum_ref[...] += jnp.where(valid, loss, 0.0)
            cnt_ref[...] += valid.astype(jnp.float32)


def _vmem_capacity_bytes():
    try:
        return int(pltpu.get_tpu_info().vmem_capacity_bytes)
    except Exception:
        return 64 * 1024 * 1024      # conservative fallback (v7x per-TensorCore VMEM)


def _round_up(x, m):
    return -(-x // m) * m


def _sublane_pad(rows, itemsize):
    # second-minor VMEM tile: 8 sublanes of 32-bit -> 8 * (4 // itemsize) rows
    return _round_up(max(rows, 1), 8 * (4 // itemsize))


def _label_dtype(num_classes, ignore_label):
    lo = min(0, int(ignore_label))
    hi = max(num_classes - 1, int(ignore_label))
    if -128 <= lo and hi <= 127:
        return jnp.int8
    if -32768 <= lo and hi <= 32767:
        return jnp.int16
    return jnp.int32


def _per_pixel_vmem_bytes(num_classes, logit_itemsize, label_itemsize):
    logits = 2 * _sublane_pad(num_classes, logit_itemsize) * logit_itemsize   # double-buffered
    labels = 2 * _sublane_pad(1, label_itemsize) * label_itemsize
    outs = 2 * 2 * _sublane_pad(1, 4) * 4                                     # sum + cnt
    iota = _sublane_pad(num_classes, 4) * 4                                   # class iota scratch
    return logits + labels + outs + iota


def _pick_pixel_tile(num_pixels, num_classes, logit_itemsize, label_itemsize):
    """Largest pixel tile (multiple of 128, <= num_pixels, <= 64K) whose double-buffered
    streams fit comfortably in VMEM on every TPU generation."""
    if num_pixels <= 128:
        return num_pixels            # block == full lane extent is always a legal last dim
    budget = min(_vmem_capacity_bytes() // 2, 48 * 1024 * 1024)
    tile = budget // _per_pixel_vmem_bytes(num_classes, logit_itemsize, label_itemsize)
    tile = min(tile, 65536, num_pixels)
    return max(128, (tile // 128) * 128)


def cross_entropy_loss(score, target, ignore_label=-1, tile=None):
    """score: (N, C, H, W) float logits; target: (N, h, w) int labels (ignore_label allowed).
    Matches nn.CrossEntropyLoss(ignore_index=ignore_label, reduction='mean') applied after an
    optional bilinear resize of score to target's spatial size."""
    # TODO(synk): per-class `weight` of nn.CrossEntropyLoss (default None in the module) is
    # not implemented.
    N, C, ph, pw = score.shape
    h, w = int(target.shape[1]), int(target.shape[2])
    if (ph, pw) != (h, w):
        # F.upsample(mode='bilinear') == F.interpolate(align_corners=False); jax.image.resize
        # 'bilinear' uses the same half-pixel convention.  antialias=False matches PyTorch
        # exactly even if the score were ever downsampled.
        score = jax.image.resize(score, (N, C, h, w), method="bilinear", antialias=False)
        # TODO(synk): fusing this bilinear upsample into the kernel (streaming low-res logits
        # and interpolating in VMEM) would remove the dominant extra HBM pass.

    HW = h * w
    logits = score.reshape(N, C, HW)                        # free reshape: no extra HBM pass
    label_dtype = _label_dtype(C, ignore_label)
    labels = target.reshape(N, 1, HW).astype(label_dtype)   # narrowed labels -> fewer HBM bytes

    logit_itemsize = jnp.dtype(logits.dtype).itemsize       # bf16 stays bf16 -> half HBM bytes
    label_itemsize = jnp.dtype(label_dtype).itemsize
    if tile is None:
        tile_p = _pick_pixel_tile(HW, C, logit_itemsize, label_itemsize)
    else:
        tile_p = HW if HW <= 128 else max(128, (min(int(tile), HW) // 128) * 128)
    num_tiles = pl.cdiv(HW, tile_p)

    # If the tile count is odd, try a slightly smaller tile that yields an even count so the
    # pixel range can be split across two "parallel" halves (uses both v7x TensorCores even
    # when N == 1; free on single-TC v5e/v6e).
    if tile is None and num_tiles > 1 and num_tiles % 2 == 1:
        alt = max(128, _round_up(pl.cdiv(HW, num_tiles + 1), 128))
        if pl.cdiv(HW, alt) % 2 == 0:
            tile_p = alt
            num_tiles = pl.cdiv(HW, alt)

    halves = 2 if (num_tiles >= 2 and num_tiles % 2 == 0) else 1
    tiles_per_half = num_tiles // halves

    kernel = functools.partial(
        _ce_kernel, ignore_label=ignore_label, num_pixels=HW,
        tile_p=tile_p, num_tiles=num_tiles, tiles_per_half=tiles_per_half)

    # VMEM limit from the actual buffer footprint (+50% / 2 MiB headroom), not 3/4 of the chip.
    footprint = _per_pixel_vmem_bytes(C, logit_itemsize, label_itemsize) * tile_p
    vmem_limit = int(min(_vmem_capacity_bytes(),
                         max(footprint * 3 // 2 + (2 << 20), 8 << 20)))

    part_sum, part_cnt = pl.pallas_call(
        kernel,
        out_shape=(jax.ShapeDtypeStruct((N * halves, 1, tile_p), jnp.float32),
                   jax.ShapeDtypeStruct((N * halves, 1, tile_p), jnp.float32)),
        grid_spec=pltpu.PrefetchScalarGridSpec(
            num_scalar_prefetch=0,
            grid=(N, halves, tiles_per_half),
            in_specs=[
                pl.BlockSpec((1, C, tile_p),
                             lambda n, hh, k: (n, 0, hh * tiles_per_half + k)),
                pl.BlockSpec((1, 1, tile_p),
                             lambda n, hh, k: (n, 0, hh * tiles_per_half + k)),
            ],
            out_specs=(
                pl.BlockSpec((1, 1, tile_p), lambda n, hh, k: (n * halves + hh, 0, 0)),
                pl.BlockSpec((1, 1, tile_p), lambda n, hh, k: (n * halves + hh, 0, 0)),
            ),
            scratch_shapes=[pltpu.VMEM((1, C, tile_p), jnp.int32)],
        ),
        compiler_params=pltpu.CompilerParams(
            dimension_semantics=("parallel", "parallel", "arbitrary"),
            vmem_limit_bytes=vmem_limit,
        ),
    )(logits, labels)

    # Tiny final reduction; mean over non-ignored pixels (reduction='mean').
    # NOTE: if every pixel is ignored this is 0/0 = NaN, matching PyTorch's behavior.
    return jnp.sum(part_sum) / jnp.sum(part_cnt)


def _reference_loss(score, target, ignore_label=-1):
    """Plain-JAX reference matching nn.CrossEntropyLoss(ignore_index=ignore_label)."""
    N, C, ph, pw = score.shape
    h, w = target.shape[1], target.shape[2]
    if (ph, pw) != (h, w):
        score = jax.image.resize(score, (N, C, h, w), method="bilinear", antialias=False)
    logits = jnp.transpose(score, (0, 2, 3, 1)).reshape(-1, C).astype(jnp.float32)
    t = target.reshape(-1)
    lse = jax.nn.logsumexp(logits, axis=-1)
    picked = jnp.take_along_axis(logits, jnp.clip(t, 0, C - 1)[:, None], axis=-1)[:, 0]
    valid = t != ignore_label
    losses = jnp.where(valid, lse - picked, 0.0)
    return jnp.sum(losses) / jnp.sum(valid)


if __name__ == "__main__":
    key = jax.random.PRNGKey(0)
    k_score, k_tgt, k_ign, k_s2, k_t2, k_s3, k_t3, k_i3 = jax.random.split(key, 8)

    # Case 1: logits already at the label resolution, with some ignored pixels (single tile).
    N, C, H, W = 2, 4, 16, 16
    score = jax.random.normal(k_score, (N, C, H, W), dtype=jnp.float32)
    target = jax.random.randint(k_tgt, (N, H, W), 0, C, dtype=jnp.int32)
    ignore_mask = jax.random.uniform(k_ign, (N, H, W)) < 0.1
    target = jnp.where(ignore_mask, -1, target)

    loss = jax.block_until_ready(cross_entropy_loss(score, target, ignore_label=-1))
    ref = _reference_loss(score, target, ignore_label=-1)
    assert jnp.allclose(loss, ref, atol=1e-5, rtol=1e-5), (loss, ref)

    # Case 2: bilinear-upsample path + ragged pixel count (H*W = 240, not a multiple of 128),
    # exercising the in-kernel tail mask and the two-half parallel pixel split.
    score2 = jax.random.normal(k_s2, (1, 4, 6, 10), dtype=jnp.float32)
    target2 = jax.random.randint(k_t2, (1, 12, 20), 0, 4, dtype=jnp.int32)
    loss2 = jax.block_until_ready(cross_entropy_loss(score2, target2, ignore_label=-1))
    ref2 = _reference_loss(score2, target2, ignore_label=-1)
    assert jnp.allclose(loss2, ref2, atol=1e-5, rtol=1e-5), (loss2, ref2)

    # Case 3: forced small tile -> multi-tile reduction per half (no ragged tail), bf16 logits
    # streamed as bf16 and upcast in-kernel, int8 labels, ignored pixels.
    score3 = jax.random.normal(k_s3, (1, 3, 16, 48), dtype=jnp.float32).astype(jnp.bfloat16)
    target3 = jax.random.randint(k_t3, (1, 16, 48), 0, 3, dtype=jnp.int32)
    ignore3 = jax.random.uniform(k_i3, (1, 16, 48)) < 0.2
    target3 = jnp.where(ignore3, -1, target3)
    loss3 = jax.block_until_ready(
        cross_entropy_loss(score3, target3, ignore_label=-1, tile=128))
    ref3 = _reference_loss(score3.astype(jnp.float32), target3, ignore_label=-1)
    assert jnp.allclose(loss3, ref3, atol=1e-3, rtol=1e-3), (loss3, ref3)

    print("KERNEL_OK")
</pallas_src>

<mosaic_0001>
module attributes {stable_mosaic.version = 11 : i64} {
  func.func @_ce_kernel(%arg0: i32, %arg1: i32, %arg2: i32, %arg3: memref<1x4x256xf32, #tpu.memory_space<vmem>>, %arg4: memref<1x1x256xi8, #tpu.memory_space<vmem>>, %arg5: memref<1x1x256xf32, #tpu.memory_space<vmem>>, %arg6: memref<1x1x256xf32, #tpu.memory_space<vmem>>, %arg7: memref<1x4x256xi32, #tpu.memory_space<vmem>>) attributes {dimension_semantics = [#tpu.dimension_semantics<parallel>, #tpu.dimension_semantics<parallel>, #tpu.dimension_semantics<arbitrary>], iteration_bounds = array<i64: 2, 1, 1>, scalar_prefetch = 0 : i64, scratch_operands = 1 : i64, tpu.core_type = #tpu.core_type<tc>, window_params = [{transform_indices = @transform_0, window_bounds = array<i64: 1, 4, 256>}, {transform_indices = @transform_1, window_bounds = array<i64: 1, 1, 256>}, {transform_indices = @transform_2, window_bounds = array<i64: 1, 1, 256>}, {transform_indices = @transform_3, window_bounds = array<i64: 1, 1, 256>}]} {
    %c0_i32 = arith.constant 0 : i32
    %0 = arith.cmpi eq, %arg2, %c0_i32 : i32
    %1 = arith.extui %0 : i1 to i32
    %c0_i32_0 = arith.constant 0 : i32
    %2 = arith.cmpi ne, %1, %c0_i32_0 : i32
    scf.if %2 {
      %cst_25 = arith.constant 0.000000e+00 : f32
      %35 = vector.broadcast %cst_25 : f32 to vector<1x1x256xf32>
      %c0_26 = arith.constant 0 : index
      %c0_27 = arith.constant 0 : index
      %c0_28 = arith.constant 0 : index
      %36 = vector.load %arg5[%c0_26, %c0_27, %c0_28] : memref<1x1x256xf32, #tpu.memory_space<vmem>>, vector<1x1x256xf32>
      tpu.vector_store %arg5[%c0_26, %c0_27, %c0_28], %35 {strides = array<i32>} : memref<1x1x256xf32, #tpu.memory_space<vmem>>, vector<1x1x256xf32>,
      %cst_29 = arith.constant 0.000000e+00 : f32
      %37 = vector.broadcast %cst_29 : f32 to vector<1x1x256xf32>
      %c0_30 = arith.constant 0 : index
      %c0_31 = arith.constant 0 : index
      %c0_32 = arith.constant 0 : index
      %38 = vector.load %arg6[%c0_30, %c0_31, %c0_32] : memref<1x1x256xf32, #tpu.memory_space<vmem>>, vector<1x1x256xf32>
      tpu.vector_store %arg6[%c0_30, %c0_31, %c0_32], %37 {strides = array<i32>} : memref<1x1x256xf32, #tpu.memory_space<vmem>>, vector<1x1x256xf32>,
      %39 = tpu.iota {dimensions = array<i32: 1>} : vector<1x4x256xi32>
      %c0_33 = arith.constant 0 : index
      %c0_34 = arith.constant 0 : index
      %c0_35 = arith.constant 0 : index
      %40 = vector.load %arg7[%c0_33, %c0_34, %c0_35] : memref<1x4x256xi32, #tpu.memory_space<vmem>>, vector<1x4x256xi32>
      tpu.vector_store %arg7[%c0_33, %c0_34, %c0_35], %39 {strides = array<i32>} : memref<1x4x256xi32, #tpu.memory_space<vmem>>, vector<1x4x256xi32>,
    } else {
    }
    %c0 = arith.constant 0 : index
    %c0_1 = arith.constant 0 : index
    %c0_2 = arith.constant 0 : index
    %3 = vector.load %arg3[%c0, %c0_1, %c0_2] : memref<1x4x256xf32, #tpu.memory_space<vmem>>, vector<1x4x256xf32>
    %c0_3 = arith.constant 0 : index
    %c0_4 = arith.constant 0 : index
    %c0_5 = arith.constant 0 : index
    %4 = vector.load %arg4[%c0_3, %c0_4, %c0_5] : memref<1x1x256xi8, #tpu.memory_space<vmem>>, vector<1x1x256xi8>
    %5 = arith.extsi %4 : vector<1x1x256xi8> to vector<1x1x256xi32>
    %cst = arith.constant dense<0xFF800000> : vector<1x256xf32>
    %6 = vector.multi_reduction <maximumf>, %3, %cst [1] : vector<1x4x256xf32> to vector<1x256xf32>
    %7 = vector.shape_cast %6 : vector<1x256xf32> to vector<1x1x256xf32>
    %8 = vector.broadcast %7 : vector<1x1x256xf32> to vector<1x4x256xf32>
    %9 = arith.subf %3, %8 : vector<1x4x256xf32>
    %10 = math.exp %9 : vector<1x4x256xf32>
    %cst_6 = arith.constant dense<0.000000e+00> : vector<1x256xf32>
    %11 = vector.multi_reduction <add>, %10, %cst_6 [1] : vector<1x4x256xf32> to vector<1x256xf32>
    %12 = vector.shape_cast %11 : vector<1x256xf32> to vector<1x1x256xf32>
    %13 = math.log %12 : vector<1x1x256xf32>
    %14 = arith.addf %7, %13 : vector<1x1x256xf32>
    %c0_7 = arith.constant 0 : index
    %c0_8 = arith.constant 0 : index
    %c0_9 = arith.constant 0 : index
    %15 = vector.load %arg7[%c0_7, %c0_8, %c0_9] : memref<1x4x256xi32, #tpu.memory_space<vmem>>, vector<1x4x256xi32>
    %16 = vector.broadcast %5 : vector<1x1x256xi32> to vector<1x4x256xi32>
    %17 = arith.cmpi eq, %15, %16 : vector<1x4x256xi32>
    %cst_10 = arith.constant 0.000000e+00 : f32
    %18 = vector.broadcast %cst_10 : f32 to vector<1x4x256xf32>
    %19 = arith.select %17, %3, %18 : vector<1x4x256xi1>, vector<1x4x256xf32>
    %cst_11 = arith.constant dense<0.000000e+00> : vector<1x256xf32>
    %20 = vector.multi_reduction <add>, %19, %cst_11 [1] : vector<1x4x256xf32> to vector<1x256xf32>
    %21 = vector.shape_cast %20 : vector<1x256xf32> to vector<1x1x256xf32>
    %22 = arith.subf %14, %21 : vector<1x1x256xf32>
    %c-1_i32 = arith.constant -1 : i32
    %23 = vector.broadcast %c-1_i32 : i32 to vector<1x1x256xi32>
    %24 = arith.cmpi ne, %5, %23 : vector<1x1x256xi32>
    %c0_12 = arith.constant 0 : index
    %c0_13 = arith.constant 0 : index
    %c0_14 = arith.constant 0 : index
    %25 = vector.load %arg5[%c0_12, %c0_13, %c0_14] : memref<1x1x256xf32, #tpu.memory_space<vmem>>, vector<1x1x256xf32>
    %cst_15 = arith.constant 0.000000e+00 : f32
    %26 = vector.broadcast %cst_15 : f32 to vector<1x1x256xf32>
    %27 = arith.select %24, %22, %26 : vector<1x1x256xi1>, vector<1x1x256xf32>
    %28 = arith.addf %25, %27 : vector<1x1x256xf32>
    %c0_16 = arith.constant 0 : index
    %c0_17 = arith.constant 0 : index
    %c0_18 = arith.constant 0 : index
    %29 = vector.load %arg5[%c0_16, %c0_17, %c0_18] : memref<1x1x256xf32, #tpu.memory_space<vmem>>, vector<1x1x256xf32>
    tpu.vector_store %arg5[%c0_16, %c0_17, %c0_18], %28 {strides = array<i32>} : memref<1x1x256xf32, #tpu.memory_space<vmem>>, vector<1x1x256xf32>,
    %c0_19 = arith.constant 0 : index
    %c0_20 = arith.constant 0 : index
    %c0_21 = arith.constant 0 : index
    %30 = vector.load %arg6[%c0_19, %c0_20, %c0_21] : memref<1x1x256xf32, #tpu.memory_space<vmem>>, vector<1x1x256xf32>
    %31 = arith.extui %24 : vector<1x1x256xi1> to vector<1x1x256xi32>
    %32 = arith.sitofp %31 : vector<1x1x256xi32> to vector<1x1x256xf32>
    %33 = arith.addf %30, %32 : vector<1x1x256xf32>
    %c0_22 = arith.constant 0 : index
    %c0_23 = arith.constant 0 : index
    %c0_24 = arith.constant 0 : index
    %34 = vector.load %arg6[%c0_22, %c0_23, %c0_24] : memref<1x1x256xf32, #tpu.memory_space<vmem>>, vector<1x1x256xf32>
    tpu.vector_store %arg6[%c0_22, %c0_23, %c0_24], %33 {strides = array<i32>} : memref<1x1x256xf32, #tpu.memory_space<vmem>>, vector<1x1x256xf32>,
    return
  }
  func.func @transform_0(%arg0: i32, %arg1: i32, %arg2: i32) -> (i32, i32, i32) {
    %c1_i32 = arith.constant 1 : i32
    %0 = arith.muli %arg1, %c1_i32 : i32
    %1 = arith.addi %0, %arg2 : i32
    %c0_i32 = arith.constant 0 : i32
    %c0_i32_0 = arith.constant 0 : i32
    return %arg0, %c0_i32, %1 : i32, i32, i32
  }
  func.func @transform_1(%arg0: i32, %arg1: i32, %arg2: i32) -> (i32, i32, i32) {
    %c1_i32 = arith.constant 1 : i32
    %0 = arith.muli %arg1, %c1_i32 : i32
    %1 = arith.addi %0, %arg2 : i32
    %c0_i32 = arith.constant 0 : i32
    %c0_i32_0 = arith.constant 0 : i32
    return %arg0, %c0_i32, %1 : i32, i32, i32
  }
  func.func @transform_2(%arg0: i32, %arg1: i32, %arg2: i32) -> (i32, i32, i32) {
    %c1_i32 = arith.constant 1 : i32
    %0 = arith.muli %arg0, %c1_i32 : i32
    %1 = arith.addi %0, %arg1 : i32
    %c0_i32 = arith.constant 0 : i32
    %c0_i32_0 = arith.constant 0 : i32
    %c0_i32_1 = arith.constant 0 : i32
    return %1, %c0_i32, %c0_i32_0 : i32, i32, i32
  }
  func.func @transform_3(%arg0: i32, %arg1: i32, %arg2: i32) -> (i32, i32, i32) {
    %c1_i32 = arith.constant 1 : i32
    %0 = arith.muli %arg0, %c1_i32 : i32
    %1 = arith.addi %0, %arg1 : i32
    %c0_i32 = arith.constant 0 : i32
    %c0_i32_0 = arith.constant 0 : i32
    %c0_i32_1 = arith.constant 0 : i32
    return %1, %c0_i32, %c0_i32_0 : i32, i32, i32
  }
}

</mosaic_0001>

<bundles_post_ra>
// kernel: tpu_custom_call.1
= control target key start
LH: loop header
LB: loop body
LE: loop exit
PB: predicated region body
PF: predicated region fallthrough
CT: control target
= control target key end

     0   :  { %9 = vsyncpa [#allocation4], 0  ;;  %s1104_s0 = inlined_call_operand.hbm [shape: f32[2,4,256], index: 0, kind: input, shape index: {}]   ;;  %s1105_s1 = inlined_call_operand.vmem [shape: s8[2,1,256], index: 1, kind: input, shape index: {}]   ;;  %s1106_s2 = inlined_call_operand.hbm [shape: f32[2,1,256], index: 2, kind: output, shape index: {0}]   ;;  %s1107_s3 = inlined_call_operand.hbm [shape: f32[2,1,256], index: 3, kind: output, shape index: {1}]  }
   0x1   :  { %11 = vsyncpa [#allocation4 + $0x1], 0 }
   0x2   :  { %12 = vsyncpa [#allocation5], 0 }
   0x3   :  { %14 = vsyncpa [#allocation5 + $0x1], 0 }
   0x4   :  { %15 = vsyncpa [#allocation8], 0 }
   0x5   :  { %17 = vsyncpa [#allocation8 + $0x1], 0  ;;  %s869_s12 = smov 0   ;;  %s871_s13 = smov 0  }
   0x6   :  { %s873_s14 = smov 0   ;;  %s875_s15 = smov 0  }
   0x7   :  { %s877_s16 = smov 0   ;;  %s879_s17 = smov 0  }
   0x8 LB: > { %s602_s18 = sadd.s32 4294967295, %s841_s17   ;;  %s603_s19 = sadd.s32 4294967294, %s841_s17   ;;  %s841_s17 = sphi %s879_s17, %s23_s17   ;;  %s837_s16 = sphi %s877_s16, %s1121_s16   ;;  %s833_s15 = sphi %s875_s15, %s1120_s15   ;;  %s829_s14 = sphi %s873_s14, %s1119_s14   ;;  %s825_s13 = sphi %s871_s13, %s1118_s13   ;;  %s821_s12 = sphi %s869_s12, %s1117_s12  }
   0x9   : > { %s42_s20 = sadd.s32 1, %s837_s16  ;;  %s53_s21 = sadd.s32 1, %s829_s14 }
   0xa   : > { %p44_p0 = scmp.ge.s32.totalorder %s42_s20, 2  ;;  %p60_p1 = scmp.ne.s32.totalorder %s829_s14, %s825_s13 }
   0xb   : > { %p61_p2 = scmp.eq.s32.totalorder %s841_s17, 0  ;;  %p66_p3 = scmp.ne.s32.totalorder %s825_s13, %s821_s12 }
   0xc   : > { %s1123_s20 = smov (%p44_p0, %s42_s20), 0  ;;  %p67_p5 = scmp.eq.s32.totalorder %s602_s18, 0 }
   0xd   : > { %p910_p4 = por %p61_p2, %p60_p1  ;;  %s48_s23 = ssub.s32 %s837_s16, %s1123_s20 }
   0xe   : > { %p122_p6 = scmp.eq.s32.totalorder %s602_s18, 1  ;;  %p51_p7 = scmp.eq.s32.totalorder %s48_s23, 0 }
   0xf   : > { %p916_p8 = por %p67_p5, %p66_p3  ;;  %p128_p10 = scmp.eq.s32.totalorder %s603_s19, 1 }
  0x10   : > { %p920_p9 = por %p122_p6, %p60_p1  ;;  %p643_p13 = scmp.lt.s32.totalorder %s841_s17, 2 }
  0x11   : > { %s925_s26 = scalar_select %p51_p7, %s829_s14, %s53_s21  }
  0x12   : > { %p927_p11 = por %p128_p10, %p66_p3  ;;  %s176_s28 = sand.u32 1, %s829_s14  }
  0x13   : > { %s606_s29 = sshll.u32 %s176_s28, 3  ;;  %s623_s30 = sshll.u32 %s837_s16, 7 }
  0x14   : > { %s1111_s27 = scalar_select %p927_p11, 1, 0 }
  0x15   : > { %s189_s6 = scalar_lea.hbm %s1104_s0, %s623_s30  ;;  %s180_s7 = scalar_lea.vmem [#allocation3], %s606_s29 }
  0x16   : > { %s191_s8 = sshll.u32 %s180_s7, 4  ;;  %p940_p0 = pnand %p643_p13, %p910_p4  ;;  %s192_s8 = int_to_ptr.vmem [resolvable:$true] %s191_s8 }
  0x17   : > { %p609_p1 = scmp.ge.s32.totalorder %s841_s17, 1  ;;  %p210_p2 = scmp.lt.s32.totalorder %s841_s17, 3 }
  0x18   : > { %s177_s10 = scalar_lea.sflag [#allocation4], %s176_s28  ;;  %p705_p3 = pneg %p940_p0 }
  0x19   : > { %s716_s11 = scalar_lea.vmem %s192_s8, 128  ;;  %s843_s18 = smov [#allocation3]  }
  0x1a   : > { %p717_p5 = scmp.ne.s32.totalorder %s192_s8, %s716_s11  ;;  %s721_s19 = sshll.u32 %s843_s18, 4  ;;  %s722_s19 = int_to_ptr.vmem [resolvable:$false] %s721_s19 }
  0x1b   : > { %s723_s21 = scalar_lea.vmem %s722_s19, 256  ;;  %p724_p10 = scmp.lt.s32.totalorder %s192_s8, %s722_s19 }
  0x1c   : > { %p719_p6 = pnand %p717_p5, %p705_p3  ;;  %p725_p12 = scmp.lt.s32.totalorder %s723_s21, %s716_s11 }
  0x1e   : > { %p720_p7 = pneg %p719_p6  ;;  %p726_p4 = por %p725_p12, %p724_p10 }
  0x20   : > { %p727_p13 = pnand %p726_p4, %p720_p7 }
  0x22   : > { %730 = shalt.err (!%p727_p13)
}
  0x23   : > { %635 = dma.hbm_to_vmem [thread:$0]  (!%p940_p0), %s189_s6, 128, %s192_s8, %s177_s10  }
  0x24   : > { %p211_p11 = pnand %p609_p1, %p210_p2 }
  0x25   : > { %s955_s22 = sand.u32 (!%p211_p11), 1, %s825_s13  }
  0x26   : > { %214 = sbr.rel (%p211_p11) target bundleno = 152 (0x98), region = 28  ;;  %s610_s23 = sshll.u32 (!%p211_p11), %s955_s22, 3 }
  0x27   : > { %s217_s28 = scalar_lea.sflag (!%p211_p11), [#allocation4], %s955_s22  ;;  %s220_s29 = scalar_lea.vmem (!%p211_p11), [#allocation3], %s610_s23 }
  0x2b   : > { %808 = dma.done.wait (%p916_p8), %s217_s28, 128  }
  0x2c   : > { %810 = vsyncadd (%p916_p8), %s217_s28, 4294967168  ;;  %s611_s30 = sshll.u32 %s955_s22, 1  ;;  %p261_p12 = scmp.lt.s32.totalorder %s833_s15, 1  ;;  %v276_v0 = vlaneseq  ;;  %v844_v2 = vmov 1966171168   ;;  %v845_v4 = vmov 0.0  }
  0x2d   : > { %v391_v3 = vunpack.c.l.s4 %v844_v2  ;;  %s970_s5 = scalar_lea.vmem [#allocation6], %s611_s30  ;;  %s975_s24 = scalar_lea.vmem [#allocation7], %s611_s30  ;;  %vm298_vm1 = vcmask 1043456   ;;  %v985_v7 = vld [vmem:[%s220_s29] sm:$0xff] }
  0x2e   : > { %s262_s4 = scalar_select %p261_p12, %s833_s15, 1  ;;  %vm966_vm0 = vcmp.lt.s32.totalorder %v276_v0, 256  ;;  %v983_v6 = vshrl.u32 %v276_v0, 7  ;;  %v296_v10 = vcombine.high %v985_v7, %v985_v7  ;;  %v299_v11 = vsel %vm298_vm1, %v985_v7, -inf }
  0x2f   : > { %280 = vst.msk [vmem:[%s970_s5] sm:$0x3] %vm966_vm0, %v845_v4  ;;  %281 = vst.msk [vmem:[%s975_s24] sm:$0x3] %vm966_vm0, %v845_v4  ;;  %v392_v5 = vunpack.c.0.s8 %v391_v3  ;;  %v300_v13 = vrot.slane %v299_v11, 4  ;;  %s624_s10 = sshll.u32 %s833_s15, 5 }
  0x30   : > { %s613_s6 = sshll.u32 %s262_s4, 1  ;;  %v306_v14 = vsel %vm298_vm1, %v296_v10, -inf  ;;  %s468_s11 = sshll.u32 %s975_s24, 4  ;;  %s1012_s11 = int_to_ptr.vmem [resolvable:$true] %s468_s11 }
  0x31   : > { %s267_s9 = scalar_lea.vmem %s1105_s1, %s613_s6  ;;  %v994_v12 = vsub.s32 %v392_v5, %v983_v6  ;;  %v301_v15 = vmax.f32 %v299_v11, %v300_v13  ;;  %v307_v16 = vrot.slane %v306_v14, 4  ;;  %s1010_s21 = scalar_lea.hbm %s1107_s3, %s624_s10 }
  0x32   : > { %v293_v8 = vld [vmem:[%s267_s9] sm:$0x3]  ;;  %s438_s23 = scalar_lea.sflag [#allocation8], %s955_s22  ;;  %s731_s28 = scalar_lea.vmem %s1012_s11, 32 }
  0x33   : > { %v987_v9 = vunpack.c.0.s8 %v293_v8  ;;  %v302_v19 = vrot.slane %v301_v15, 2  ;;  %v308_v20 = vmax.f32 %v306_v14, %v307_v16  ;;  %p732_p8 = scmp.ne.s32.totalorder %s1012_s11, %s731_s28  ;;  %s846_s29 = smov [#allocation7]  }
  0x34   : > { %s735_s30 = sshll.u32 %s846_s29, 4  ;;  %s736_s30 = int_to_ptr.vmem [resolvable:$false] %s735_s30 }
  0x35   : > { %vm382_vm2 = vcmp.ne.s32.totalorder %v987_v9, 4294967295  ;;  %v303_v23 = vmax.f32 %v301_v15, %v302_v19  ;;  %v309_v24 = vrot.slane %v308_v20, 2  ;;  %p733_p11 = pnand %p732_p8, %p920_p9  ;;  %s737_s4 = scalar_lea.vmem %s736_s30, 64 }
  0x36   : > { %v614_v17 = vsel %vm382_vm2, 1.0, %v845_v4  ;;  %v411_v21 = vld [vmem:[%s975_s24] sm:$0x3]  ;;  %p738_p1 = scmp.lt.s32.totalorder %s1012_s11, %s736_s30  ;;  %p739_p2 = scmp.lt.s32.totalorder %s737_s4, %s731_s28 }
  0x37   : > { %v421_v18 = vrot.slane %v614_v17, %v994_v12  ;;  %v304_v26 = vrot.slane %v303_v23, 1  ;;  %v310_v27 = vmax.f32 %v308_v20, %v309_v24  ;;  %p734_p0 = pneg %p733_p11 }
  0x38   : > { %p740_p3 = por %p739_p2, %p738_p1 }
  0x39   : > { %v428_v22 = vrot.slane %v421_v18, %v994_v12  ;;  %v1017_v28 = vmax.f32 %v303_v23, %v304_v26  ;;  %v311_v29 = vrot.slane %v310_v27, 1 }
  0x3a   : > { %p741_p5 = pnand %p740_p3, %p734_p0 }
  0x3b   : > { %v430_v25 = vadd.f32 %v428_v22, %v411_v21 }
  0x3d   : > { %431 = vst.msk [vmem:[%s975_s24] sm:$0x3] %vm966_vm0, %v430_v25 }
  0x3e   : > { %744 = shalt.err (!%p741_p5)
}
  0x3f   : > { %s745_s24 = scalar_lea.hbm %s1010_s21, 32  ;;  %s749_s8 = scalar_lea.hbm %s1107_s3, 64 }
  0x40   : > { %p746_p6 = scmp.ne.s32.totalorder %s1010_s21, %s745_s24  ;;  %p750_p4 = scmp.lt.s32.totalorder %s1010_s21, %s1107_s3 }
  0x41   : > { %p751_p13 = scmp.lt.s32.totalorder %s749_s8, %s745_s24 }
  0x42   : > { %p747_p7 = pnand %p746_p6, %p920_p9 }
  0x43   : > { %p752_p12 = por %p751_p13, %p750_p4 }
  0x44   : > { %p748_p10 = pneg %p747_p7 }
  0x46   : > { %p753_p8 = pnand %p752_p12, %p748_p10 }
  0x48   : > { %756 = shalt.err (!%p753_p8)
}
  0x49   : > { %629 = dma.vmem_to_hbm [thread:$0]  (%p920_p9), %s1012_s11, 32, %s1010_s21, %s438_s23   ;;  %v312_v30 = vmax.f32 %v310_v27, %v311_v29  ;;  %v847_v31 = vmov 839922192   ;;  %v346_v34 = vsub.s32 0, %v983_v6  ;;  %v350_v35 = vsub.s32 4, %v983_v6 }
  0x4a   : > { %v285_v32 = vunpack.c.l.s4 %v847_v31  ;;  %v383_v29 = vld [vmem:[%s970_s5] sm:$0x3]  ;;  %s453_s11 = sshll.u32 %s970_s5, 4  ;;  %s451_s23 = scalar_lea.hbm %s1106_s2, %s624_s10  ;;  %s454_s11 = int_to_ptr.vmem [resolvable:$true] %s453_s11 }
  0x4b   : > { %v315_v33 = vcombine.low %v1017_v28, %v312_v30  ;;  %v347_v39 = vrot.slane %v987_v9, %v346_v34  ;;  %v351_v40 = vrot.slane %v987_v9, %v350_v35  ;;  %s433_s28 = scalar_lea.sflag [#allocation5], %s955_s22  ;;  %s757_s29 = scalar_lea.vmem %s454_s11, 32 }
  0x4c   : > { %v286_v37 = vunpack.c.0.s8 %v285_v32  ;;  %p758_p11 = scmp.ne.s32.totalorder %s454_s11, %s757_s29  ;;  %s848_s30 = smov [#allocation6]  }
  0x4d   : > { %v317_v36 = vsub.f32 %v985_v7, %v315_v33  ;;  %v355_v42 = vrot.slane %v347_v39, %v346_v34  ;;  %v359_v43 = vrot.slane %v351_v40, %v346_v34  ;;  %s761_s4 = sshll.u32 %s848_s30, 4  ;;  %s762_s4 = int_to_ptr.vmem [resolvable:$false] %s761_s4 }
  0x4e   : > { %v289_v41 = vsub.s32 %v286_v37, %v983_v6  ;;  %p759_p0 = pnand %p758_p11, %p920_p9  ;;  %s763_s24 = scalar_lea.vmem %s762_s4, 64 }
  0x4f   : > { %v318_v38 = vmul.f32 1.442695, %v317_v36  ;;  %v360_v45 = vcombine.low %v355_v42, %v359_v43  ;;  %p764_p2 = scmp.lt.s32.totalorder %s454_s11, %s762_s4  ;;  %p765_p3 = scmp.lt.s32.totalorder %s763_s24, %s757_s29 }
  0x50   : > { %v290_v44 = vrot.slane %v983_v6, %v289_v41  ;;  %p760_p1 = pneg %p759_p0 }
  0x51   : > { %697 = vpow2.f32 %v318_v38  ;;  %p766_p5 = por %p765_p3, %p764_p2 }
  0x52   : > { %vm361_vm3 = vcmp.eq.s32.totalorder %v290_v44, %v360_v45 }
  0x53   : > { %v362_v47 = vsel %vm361_vm3, %v985_v7, 0.0  ;;  %p767_p6 = pnand %p766_p5, %p760_p1 }
  0x54   : > { %v364_v52 = vcombine.high %v362_v47, %v362_v47  ;;  %v366_v55 = vsel %vm298_vm1, %v362_v47, 0.0 }
  0x55   : > { %v367_v61 = vrot.slane %v366_v55, 4 }
  0x56   : > { %v373_v58 = vsel %vm298_vm1, %v364_v52, 0.0 }
  0x57   : > { %v374_v0 = vrot.slane %v373_v58, 4  ;;  %v368_v4 = vadd.f32 %v367_v61, %v366_v55 }
  0x59   : > { %v375_v6 = vadd.f32 %v374_v0, %v373_v58  ;;  %v369_v7 = vrot.slane %v368_v4, 2 }
  0x5b   : > { %v376_v8 = vrot.slane %v375_v6, 2  ;;  %v370_v10 = vadd.f32 %v369_v7, %v368_v4 }
  0x5d   : > { %v377_v11 = vadd.f32 %v376_v8, %v375_v6  ;;  %v371_v13 = vrot.slane %v370_v10, 1 }
  0x5e   : > { %v698_v46 = vpop.eup %697 }
  0x5f   : > { %v321_v48 = vcombine.high %v698_v46, %v698_v46  ;;  %v323_v49 = vsel %vm298_vm1, %v698_v46, 0.0  ;;  %v378_v14 = vrot.slane %v377_v11, 1  ;;  %v372_v17 = vadd.f32 %v371_v13, %v370_v10 }
  0x60   : > { %v324_v50 = vrot.slane %v323_v49, 4 }
  0x61   : > { %v330_v51 = vsel %vm298_vm1, %v321_v48, 0.0  ;;  %v379_v21 = vadd.f32 %v378_v14, %v377_v11 }
  0x62   : > { %v325_v53 = vadd.f32 %v324_v50, %v323_v49  ;;  %v331_v54 = vrot.slane %v330_v51, 4 }
  0x64   : > { %v326_v56 = vrot.slane %v325_v53, 2  ;;  %v332_v57 = vadd.f32 %v331_v54, %v330_v51 }
  0x66   : > { %v327_v59 = vadd.f32 %v326_v56, %v325_v53  ;;  %v333_v60 = vrot.slane %v332_v57, 2 }
  0x68   : > { %v328_v62 = vrot.slane %v327_v59, 1  ;;  %v334_v63 = vadd.f32 %v333_v60, %v332_v57 }
  0x6a   : > { %v329_v2 = vadd.f32 %v328_v62, %v327_v59  ;;  %v335_v3 = vrot.slane %v334_v63, 1 }
  0x6c   : > { %v336_v5 = vadd.f32 %v335_v3, %v334_v63  ;;  %699 = vlog2.f32 %v329_v2 }
  0x6e   : > { %701 = vlog2.f32 %v336_v5 }
  0x79   : > { %v700_v15 = vpop.eup %699 }
  0x7a   : > { %v338_v16 = vmul.f32 0.6931472, %v700_v15 }
  0x7b   : > { %v702_v18 = vpop.eup %701 }
  0x7c   : > { %v340_v19 = vmul.f32 0.6931472, %v702_v18  ;;  %v341_v20 = vadd.f32 %v338_v16, %v1017_v28 }
  0x7e   : > { %v342_v22 = vadd.f32 %v340_v19, %v312_v30  ;;  %v380_v23 = vsub.f32 %v341_v20, %v372_v17 }
  0x80   : > { %v381_v24 = vsub.f32 %v342_v22, %v379_v21 }
  0x82   : > { %v386_v25 = vcombine.low %v380_v23, %v381_v24 }
  0x84   : > { %v388_v26 = vsel %vm382_vm2, %v386_v25, 0.0 }
  0x85   : > { %v396_v27 = vrot.slane %v388_v26, %v994_v12 }
  0x87   : > { %v403_v31 = vrot.slane %v396_v27, %v994_v12 }
  0x89   : > { %v405_v32 = vadd.f32 %v403_v31, %v383_v29 }
  0x8b   : > { %410 = vst.msk [vmem:[%s970_s5] sm:$0x3] %vm966_vm0, %v405_v32 }
  0x8c   : > { %770 = shalt.err (!%p767_p6)
}
  0x8d   : > { %s771_s15 = scalar_lea.hbm %s451_s23, 32  ;;  %s775_s10 = scalar_lea.hbm %s1106_s2, 64 }
  0x8e   : > { %p772_p7 = scmp.ne.s32.totalorder %s451_s23, %s771_s15  ;;  %p776_p13 = scmp.lt.s32.totalorder %s451_s23, %s1106_s2 }
  0x8f   : > { %p777_p12 = scmp.lt.s32.totalorder %s775_s10, %s771_s15 }
  0x90   : > { %p773_p10 = pnand %p772_p7, %p920_p9 }
  0x91   : > { %p778_p8 = por %p777_p12, %p776_p13 }
  0x92   : > { %p774_p4 = pneg %p773_p10 }
  0x94   : > { %p779_p11 = pnand %p778_p8, %p774_p4 }
  0x96   : > { %782 = shalt.err (!%p779_p11)
}
  0x97   : > { %628 = dma.vmem_to_hbm [thread:$0]  (%p920_p9), %s454_s11, 32, %s451_s23, %s433_s28  }
  0x98 PF: > { %s480_s8 = sand.u32 1, %s821_s12   ;;  %p1115_p0 = scmp.ne.s32.totalorder %s1111_s27, 0 }
  0x99   : > { %p1116_p1 = scmp.ge.s32.totalorder %s841_s17, 2  ;;  %s481_s9 = scalar_lea.sflag [#allocation5], %s480_s8 }
  0x9b   : > { %p637_p2 = pnand %p1116_p1, %p1115_p0 }
  0x9d   : > { %p638_p3 = pneg %p637_p2 }
  0x9f   : > { %812 = dma.done.wait (%p638_p3), %s481_s9, 32  }
  0xa0   : > { %814 = vsyncadd (%p638_p3), %s481_s9, 4294967264  ;;  %s490_s18 = scalar_lea.sflag [#allocation8], %s480_s8 }
  0xa1   : > { %816 = dma.done.wait (%p638_p3), %s490_s18, 32  }
  0xa2   : > { %818 = vsyncadd (%p638_p3), %s490_s18, 4294967264  ;;  %s23_s17 = sadd.s32 1, %s841_s17   ;;  %s1117_s12 = smov %s825_s13 }
  0xa3   : > { %p20_p5 = scmp.ge.s32.totalorder %s23_s17, 4   ;;  %s1118_s13 = smov %s829_s14 }
  0xa4   : > { %s1119_s14 = smov %s925_s26  ;;  %s1120_s15 = smov %s837_s16 }
  0xa5   : > { %s1121_s16 = smov %s1123_s20  ;;  %22 = sbr.rel (!%p20_p5) target bundleno = 8 (0x8), region = 97 }
  0xaa   :  { %495 = vsyncpa [#allocation4], 1 }
  0xab   :  { %497 = vsyncpa [#allocation4 + $0x1], 1 }
  0xac   :  { %498 = vsyncpa [#allocation5], 1 }
  0xad   :  { %500 = vsyncpa [#allocation5 + $0x1], 1 }
  0xae   :  { %501 = vsyncpa [#allocation8], 1 }
  0xaf   :  { %503 = vsyncpa [#allocation8 + $0x1], 1 }

</bundles_post_ra>
